<compile_context>
chip_gen: v7x
topology: tpu7x:2x2x1
jax: 0.10.0
libtpu: 0.0.40
codegen_flags: <defaults>
</compile_context>

<pallas_src>
import functools

import jax
import jax.numpy as jnp
from jax.experimental import pallas as pl
from jax.experimental.pallas import tpu as pltpu


# Safe on every generation: > v5e's 16 MiB scoped default, < v7x's 64 MiB / TC.
_VMEM_BUDGET_BYTES = 48 * 1024 * 1024


# ------------------------------- kernels -----------------------------------


def _row_softmax_kernel(x_ref, o_ref, *, inv_temp):
    """Softmax over the last axis of a (tile_rows, V) block (V == full last dim)."""
    v = x_ref[...].astype(jnp.float32)
    if inv_temp is not None:
        v = v * jnp.float32(inv_temp)
    m = jnp.max(v, axis=-1, keepdims=True)
    e = jnp.exp(v - m)
    s = jnp.sum(e, axis=-1, keepdims=True)
    o_ref[...] = (e / s).astype(o_ref.dtype)  # exact division: rows sum to 1


def _butterfly_softmax_kernel(x_ref, o_ref, *, V, inv_temp):
    """Full-width segmented softmax on a lane-dense (tile, E) block.

    E = L * V with V a power of two < 128.  Per-segment max/sum are computed
    with a log2(V) XOR-butterfly: at step k every lane combines with lane
    (i XOR k).  Segments are V-aligned, so the butterfly never crosses a
    segment boundary.  jnp.roll (static shift -> lane slice + concat) is used
    instead of pltpu.roll so the kernel also runs under interpret mode; either
    way it is cheap filler in this HBM-bound kernel.
    """
    v = x_ref[...].astype(jnp.float32)
    if inv_temp is not None:
        v = v * jnp.float32(inv_temp)
    lane = jax.lax.broadcasted_iota(jnp.int32, v.shape, dimension=v.ndim - 1)

    def seg_reduce(a, combine):
        k = 1
        while k < V:
            fwd = jnp.roll(a, -k, axis=-1)  # value of lane i + k
            bwd = jnp.roll(a, k, axis=-1)   # value of lane i - k
            partner = jnp.where((lane & k) == 0, fwd, bwd)
            a = combine(a, partner)
            k *= 2
        return a

    m = seg_reduce(v, jnp.maximum)           # per-segment max, broadcast to all lanes
    e = jnp.exp(v - m)
    s = seg_reduce(e, lambda a, b: a + b)    # per-segment sum, broadcast to all lanes
    o_ref[...] = (e / s).astype(o_ref.dtype)  # single unmasked full-width store


def _chunked_softmax_kernel(x_ref, o_ref, *, L, V, inv_temp):
    """Fallback for V < 128 that is not a power of two: per-chunk softmax on
    static lane slices, assembled once and written with ONE full-width store
    (no per-chunk masked stores at unaligned lane offsets)."""
    # TODO(synk): for very large L this static unroll bloats code; non-power-of-2
    # V is a rare config so we accept it here.
    v = x_ref[...].astype(jnp.float32)
    if inv_temp is not None:
        v = v * jnp.float32(inv_temp)
    pieces = []
    for c in range(L):
        z = v[:, c * V:(c + 1) * V]
        m = jnp.max(z, axis=-1, keepdims=True)
        e = jnp.exp(z - m)
        s = jnp.sum(e, axis=-1, keepdims=True)
        pieces.append(e / s)
    o_ref[...] = jnp.concatenate(pieces, axis=-1).astype(o_ref.dtype)


# --------------------------- tiling heuristics -------------------------------


def _sublane_multiple(itemsize):
    # f32 -> 8, bf16/f16 -> 16, int8/fp8 -> 32 (sub-32-bit dtypes pack sublanes).
    return max(8, 32 // max(int(itemsize), 1))


def _default_block_bytes(itemsize):
    """Per-side block size that keeps the whole VMEM footprint in budget.

    Footprint per block of b bytes:
      2 specs (in + out) x 2 pipeline buffers          -> 4 * b
      ~3 full-block f32 temporaries inside the body    -> 3 * b * (4 / itemsize)
    """
    per_block = 4 + 3 * max(1, 4 // max(int(itemsize), 1))
    return max(1 << 20, _VMEM_BUDGET_BYTES // per_block)


def _choose_row_tile(rows, row_bytes, itemsize, target_block_bytes, min_steps):
    """Rows per block: ~target_block_bytes per block, rounded to the dtype's
    sublane packing, >= min_steps grid steps when there is enough work, and
    preferring an even step count (v7x splits the parallel axis over 2 TCs)
    and an exact divisor (no ragged tail).  A ragged last block is still fine:
    softmax is row-independent, so padded garbage rows never contaminate real
    rows and their writes are dropped."""
    rows = int(rows)
    sub = _sublane_multiple(itemsize)
    if rows <= sub:
        return rows

    def round_down(v):
        return max(sub, (int(v) // sub) * sub)

    cap_bytes = round_down(int(target_block_bytes) // max(int(row_bytes), 1))
    cap_steps = round_down(rows // max(int(min_steps), 1))
    cap = min(cap_bytes, cap_steps, round_down(rows))

    lo = max(sub, cap // 2)
    for want_even in (True, False):
        t = cap
        while t >= lo:
            if rows % t == 0:
                steps = rows // t
                if steps % 2 == 0 or not want_even:
                    return t
            t -= sub
    return cap  # ragged last block, handled by Pallas block masking


# -------------------------------- wrapper ------------------------------------


def simplicial_embedding(x, L, temperature=None, *,
                         target_block_bytes=None, min_grid_steps=8):
    """Pallas implementation of SimplicialEmbedding.forward.

    Args:
      x: (B, E) array with E divisible by L.
      L: number of embedding chunks.
      temperature: optional softmax temperature (Vs /= temperature before softmax).
    Returns:
      (B, E) array of the same dtype as x.
    """
    B, E = x.shape
    assert E % L == 0, (
        f"The embedding dimension {E} is not divisible by the chosen L parameter {L}")
    V = E // L

    inv_temp = None if temperature is None else 1.0 / float(temperature)
    itemsize = int(jnp.dtype(x.dtype).itemsize)
    if target_block_bytes is None:
        target_block_bytes = _default_block_bytes(itemsize)

    compiler_params = pltpu.CompilerParams(
        dimension_semantics=("parallel",),
        vmem_limit_bytes=_VMEM_BUDGET_BYTES,
    )
    cost = pl.CostEstimate(
        flops=4 * B * E,
        transcendentals=B * E,
        bytes_accessed=2 * B * E * itemsize,
    )

    if V >= 128:
        # Lane-dense (B*L, V) layout: one independent softmax per row.  The
        # reshape of a contiguous (B, E) array is a free metadata change.
        rows = B * L
        x2 = x.reshape(rows, V)
        tile = _choose_row_tile(rows, V * itemsize, itemsize,
                                target_block_bytes, min_grid_steps)
        out = pl.pallas_call(
            functools.partial(_row_softmax_kernel, inv_temp=inv_temp),
            out_shape=jax.ShapeDtypeStruct((rows, V), x.dtype),
            grid=(pl.cdiv(rows, tile),),
            in_specs=[pl.BlockSpec((tile, V), lambda i: (i, 0))],
            out_specs=pl.BlockSpec((tile, V), lambda i: (i, 0)),
            compiler_params=compiler_params,
            cost_estimate=cost,
        )(x2)
        return out.reshape(B, E)

    # V < 128: keep the lane-dense (B, E) layout (full-width HBM<->VMEM blocks,
    # one unmasked full-width store per block).
    if V & (V - 1) == 0:
        kernel = functools.partial(_butterfly_softmax_kernel, V=V, inv_temp=inv_temp)
    else:
        kernel = functools.partial(_chunked_softmax_kernel, L=L, V=V, inv_temp=inv_temp)
    tile = _choose_row_tile(B, E * itemsize, itemsize,
                            target_block_bytes, min_grid_steps)
    return pl.pallas_call(
        kernel,
        out_shape=jax.ShapeDtypeStruct((B, E), x.dtype),
        grid=(pl.cdiv(B, tile),),
        in_specs=[pl.BlockSpec((tile, E), lambda i: (i, 0))],
        out_specs=pl.BlockSpec((tile, E), lambda i: (i, 0)),
        compiler_params=compiler_params,
        cost_estimate=cost,
    )(x)


# ------------------------------- reference -----------------------------------


def simplicial_embedding_ref(x, L, temperature=None):
    B, E = x.shape
    V = E // L
    vs = x.reshape(B, L, V).astype(jnp.float32)
    if temperature is not None:
        vs = vs / temperature
    vs = jax.nn.softmax(vs, axis=-1)
    return vs.reshape(B, E).astype(x.dtype)


# --------------------------------- test ---------------------------------------

if __name__ == "__main__":
    key = jax.random.PRNGKey(0)
    k1, k2, k3 = jax.random.split(key, 3)

    # Case 1: V = 8 (< 128, power of two) -> full-width butterfly path, temp=0.5.
    B1, L1, E1, t1 = 2, 4, 32, 0.5
    x1 = jax.random.normal(k1, (B1, E1), dtype=jnp.float32)
    y1 = jax.block_until_ready(simplicial_embedding(x1, L1, t1))
    r1 = simplicial_embedding_ref(x1, L1, t1)
    assert y1.shape == (B1, E1)
    assert jnp.allclose(y1, r1, atol=1e-3, rtol=1e-3), "butterfly path: mismatch vs reference"
    assert jnp.allclose(y1.reshape(B1, L1, E1 // L1).sum(-1), 1.0, atol=1e-3), \
        "butterfly path: chunks do not sum to 1"

    # Case 2: V = 128 -> (B*L, V) row-softmax path, temperature=None.
    B2, L2, V2 = 2, 2, 128
    E2 = L2 * V2
    x2 = jax.random.normal(k2, (B2, E2), dtype=jnp.float32)
    y2 = jax.block_until_ready(simplicial_embedding(x2, L2, None))
    r2 = simplicial_embedding_ref(x2, L2, None)
    assert y2.shape == (B2, E2)
    assert jnp.allclose(y2, r2, atol=1e-3, rtol=1e-3), "row path: mismatch vs reference"
    assert jnp.allclose(y2.reshape(B2, L2, V2).sum(-1), 1.0, atol=1e-3), \
        "row path: chunks do not sum to 1"

    # Case 3: V = 12 (< 128, not a power of two) -> chunked fallback, temp=2.0.
    B3, L3, V3, t3 = 4, 2, 12, 2.0
    E3 = L3 * V3
    x3 = jax.random.normal(k3, (B3, E3), dtype=jnp.float32)
    y3 = jax.block_until_ready(simplicial_embedding(x3, L3, t3))
    r3 = simplicial_embedding_ref(x3, L3, t3)
    assert y3.shape == (B3, E3)
    assert jnp.allclose(y3, r3, atol=1e-3, rtol=1e-3), "chunked path: mismatch vs reference"
    assert jnp.allclose(y3.reshape(B3, L3, V3).sum(-1), 1.0, atol=1e-3), \
        "chunked path: chunks do not sum to 1"

    print("KERNEL_OK")
</pallas_src>

<mosaic_0001>
module attributes {stable_mosaic.version = 11 : i64} {
  func.func @_butterfly_softmax_kernel(%arg0: i32, %arg1: memref<2x32xf32, #tpu.memory_space<vmem>>, %arg2: memref<2x32xf32, #tpu.memory_space<vmem>>) attributes {dimension_semantics = [#tpu.dimension_semantics<parallel>], iteration_bounds = array<i64: 1>, scalar_prefetch = 0 : i64, scratch_operands = 0 : i64, tpu.core_type = #tpu.core_type<tc>, window_params = [{transform_indices = @transform_0, window_bounds = array<i64: 2, 32>}, {transform_indices = @transform_1, window_bounds = array<i64: 2, 32>}]} {
    %c0 = arith.constant 0 : index
    %c0_0 = arith.constant 0 : index
    %0 = vector.load %arg1[%c0, %c0_0] : memref<2x32xf32, #tpu.memory_space<vmem>>, vector<2x32xf32>
    %cst = arith.constant 2.000000e+00 : f32
    %1 = vector.broadcast %cst : f32 to vector<2x32xf32>
    %2 = arith.mulf %0, %1 : vector<2x32xf32>
    %3 = tpu.iota {dimensions = array<i32: 1>} : vector<2x32xi32>
    %4 = vector.extract_strided_slice %2 {offsets = [0, 1], sizes = [2, 31], strides = [1, 1]} : vector<2x32xf32> to vector<2x31xf32>
    %5 = vector.extract_strided_slice %2 {offsets = [0, 0], sizes = [2, 1], strides = [1, 1]} : vector<2x32xf32> to vector<2x1xf32>
    %6 = tpu.concatenate %4, %5 in 1 : vector<2x31xf32>, vector<2x1xf32> -> vector<2x32xf32>
    %7 = vector.extract_strided_slice %2 {offsets = [0, 31], sizes = [2, 1], strides = [1, 1]} : vector<2x32xf32> to vector<2x1xf32>
    %8 = vector.extract_strided_slice %2 {offsets = [0, 0], sizes = [2, 31], strides = [1, 1]} : vector<2x32xf32> to vector<2x31xf32>
    %9 = tpu.concatenate %7, %8 in 1 : vector<2x1xf32>, vector<2x31xf32> -> vector<2x32xf32>
    %c1_i32 = arith.constant 1 : i32
    %10 = vector.broadcast %c1_i32 : i32 to vector<2x32xi32>
    %11 = arith.andi %3, %10 : vector<2x32xi32>
    %c0_i32 = arith.constant 0 : i32
    %12 = vector.broadcast %c0_i32 : i32 to vector<2x32xi32>
    %13 = arith.cmpi eq, %11, %12 : vector<2x32xi32>
    %14 = arith.select %13, %6, %9 : vector<2x32xi1>, vector<2x32xf32>
    %15 = arith.maximumf %2, %14 : vector<2x32xf32>
    %16 = vector.extract_strided_slice %15 {offsets = [0, 2], sizes = [2, 30], strides = [1, 1]} : vector<2x32xf32> to vector<2x30xf32>
    %17 = vector.extract_strided_slice %15 {offsets = [0, 0], sizes = [2, 2], strides = [1, 1]} : vector<2x32xf32> to vector<2x2xf32>
    %18 = tpu.concatenate %16, %17 in 1 : vector<2x30xf32>, vector<2x2xf32> -> vector<2x32xf32>
    %19 = vector.extract_strided_slice %15 {offsets = [0, 30], sizes = [2, 2], strides = [1, 1]} : vector<2x32xf32> to vector<2x2xf32>
    %20 = vector.extract_strided_slice %15 {offsets = [0, 0], sizes = [2, 30], strides = [1, 1]} : vector<2x32xf32> to vector<2x30xf32>
    %21 = tpu.concatenate %19, %20 in 1 : vector<2x2xf32>, vector<2x30xf32> -> vector<2x32xf32>
    %c2_i32 = arith.constant 2 : i32
    %22 = vector.broadcast %c2_i32 : i32 to vector<2x32xi32>
    %23 = arith.andi %3, %22 : vector<2x32xi32>
    %c0_i32_1 = arith.constant 0 : i32
    %24 = vector.broadcast %c0_i32_1 : i32 to vector<2x32xi32>
    %25 = arith.cmpi eq, %23, %24 : vector<2x32xi32>
    %26 = arith.select %25, %18, %21 : vector<2x32xi1>, vector<2x32xf32>
    %27 = arith.maximumf %15, %26 : vector<2x32xf32>
    %28 = vector.extract_strided_slice %27 {offsets = [0, 4], sizes = [2, 28], strides = [1, 1]} : vector<2x32xf32> to vector<2x28xf32>
    %29 = vector.extract_strided_slice %27 {offsets = [0, 0], sizes = [2, 4], strides = [1, 1]} : vector<2x32xf32> to vector<2x4xf32>
    %30 = tpu.concatenate %28, %29 in 1 : vector<2x28xf32>, vector<2x4xf32> -> vector<2x32xf32>
    %31 = vector.extract_strided_slice %27 {offsets = [0, 28], sizes = [2, 4], strides = [1, 1]} : vector<2x32xf32> to vector<2x4xf32>
    %32 = vector.extract_strided_slice %27 {offsets = [0, 0], sizes = [2, 28], strides = [1, 1]} : vector<2x32xf32> to vector<2x28xf32>
    %33 = tpu.concatenate %31, %32 in 1 : vector<2x4xf32>, vector<2x28xf32> -> vector<2x32xf32>
    %c4_i32 = arith.constant 4 : i32
    %34 = vector.broadcast %c4_i32 : i32 to vector<2x32xi32>
    %35 = arith.andi %3, %34 : vector<2x32xi32>
    %c0_i32_2 = arith.constant 0 : i32
    %36 = vector.broadcast %c0_i32_2 : i32 to vector<2x32xi32>
    %37 = arith.cmpi eq, %35, %36 : vector<2x32xi32>
    %38 = arith.select %37, %30, %33 : vector<2x32xi1>, vector<2x32xf32>
    %39 = arith.maximumf %27, %38 : vector<2x32xf32>
    %40 = arith.subf %2, %39 : vector<2x32xf32>
    %41 = math.exp %40 : vector<2x32xf32>
    %42 = vector.extract_strided_slice %41 {offsets = [0, 1], sizes = [2, 31], strides = [1, 1]} : vector<2x32xf32> to vector<2x31xf32>
    %43 = vector.extract_strided_slice %41 {offsets = [0, 0], sizes = [2, 1], strides = [1, 1]} : vector<2x32xf32> to vector<2x1xf32>
    %44 = tpu.concatenate %42, %43 in 1 : vector<2x31xf32>, vector<2x1xf32> -> vector<2x32xf32>
    %45 = vector.extract_strided_slice %41 {offsets = [0, 31], sizes = [2, 1], strides = [1, 1]} : vector<2x32xf32> to vector<2x1xf32>
    %46 = vector.extract_strided_slice %41 {offsets = [0, 0], sizes = [2, 31], strides = [1, 1]} : vector<2x32xf32> to vector<2x31xf32>
    %47 = tpu.concatenate %45, %46 in 1 : vector<2x1xf32>, vector<2x31xf32> -> vector<2x32xf32>
    %c1_i32_3 = arith.constant 1 : i32
    %48 = vector.broadcast %c1_i32_3 : i32 to vector<2x32xi32>
    %49 = arith.andi %3, %48 : vector<2x32xi32>
    %c0_i32_4 = arith.constant 0 : i32
    %50 = vector.broadcast %c0_i32_4 : i32 to vector<2x32xi32>
    %51 = arith.cmpi eq, %49, %50 : vector<2x32xi32>
    %52 = arith.select %51, %44, %47 : vector<2x32xi1>, vector<2x32xf32>
    %53 = arith.addf %41, %52 : vector<2x32xf32>
    %54 = vector.extract_strided_slice %53 {offsets = [0, 2], sizes = [2, 30], strides = [1, 1]} : vector<2x32xf32> to vector<2x30xf32>
    %55 = vector.extract_strided_slice %53 {offsets = [0, 0], sizes = [2, 2], strides = [1, 1]} : vector<2x32xf32> to vector<2x2xf32>
    %56 = tpu.concatenate %54, %55 in 1 : vector<2x30xf32>, vector<2x2xf32> -> vector<2x32xf32>
    %57 = vector.extract_strided_slice %53 {offsets = [0, 30], sizes = [2, 2], strides = [1, 1]} : vector<2x32xf32> to vector<2x2xf32>
    %58 = vector.extract_strided_slice %53 {offsets = [0, 0], sizes = [2, 30], strides = [1, 1]} : vector<2x32xf32> to vector<2x30xf32>
    %59 = tpu.concatenate %57, %58 in 1 : vector<2x2xf32>, vector<2x30xf32> -> vector<2x32xf32>
    %c2_i32_5 = arith.constant 2 : i32
    %60 = vector.broadcast %c2_i32_5 : i32 to vector<2x32xi32>
    %61 = arith.andi %3, %60 : vector<2x32xi32>
    %c0_i32_6 = arith.constant 0 : i32
    %62 = vector.broadcast %c0_i32_6 : i32 to vector<2x32xi32>
    %63 = arith.cmpi eq, %61, %62 : vector<2x32xi32>
    %64 = arith.select %63, %56, %59 : vector<2x32xi1>, vector<2x32xf32>
    %65 = arith.addf %53, %64 : vector<2x32xf32>
    %66 = vector.extract_strided_slice %65 {offsets = [0, 4], sizes = [2, 28], strides = [1, 1]} : vector<2x32xf32> to vector<2x28xf32>
    %67 = vector.extract_strided_slice %65 {offsets = [0, 0], sizes = [2, 4], strides = [1, 1]} : vector<2x32xf32> to vector<2x4xf32>
    %68 = tpu.concatenate %66, %67 in 1 : vector<2x28xf32>, vector<2x4xf32> -> vector<2x32xf32>
    %69 = vector.extract_strided_slice %65 {offsets = [0, 28], sizes = [2, 4], strides = [1, 1]} : vector<2x32xf32> to vector<2x4xf32>
    %70 = vector.extract_strided_slice %65 {offsets = [0, 0], sizes = [2, 28], strides = [1, 1]} : vector<2x32xf32> to vector<2x28xf32>
    %71 = tpu.concatenate %69, %70 in 1 : vector<2x4xf32>, vector<2x28xf32> -> vector<2x32xf32>
    %c4_i32_7 = arith.constant 4 : i32
    %72 = vector.broadcast %c4_i32_7 : i32 to vector<2x32xi32>
    %73 = arith.andi %3, %72 : vector<2x32xi32>
    %c0_i32_8 = arith.constant 0 : i32
    %74 = vector.broadcast %c0_i32_8 : i32 to vector<2x32xi32>
    %75 = arith.cmpi eq, %73, %74 : vector<2x32xi32>
    %76 = arith.select %75, %68, %71 : vector<2x32xi1>, vector<2x32xf32>
    %77 = arith.addf %65, %76 : vector<2x32xf32>
    %78 = arith.divf %41, %77 : vector<2x32xf32>
    %c0_9 = arith.constant 0 : index
    %c0_10 = arith.constant 0 : index
    %79 = vector.load %arg2[%c0_9, %c0_10] : memref<2x32xf32, #tpu.memory_space<vmem>>, vector<2x32xf32>
    tpu.vector_store %arg2[%c0_9, %c0_10], %78 {strides = array<i32>} : memref<2x32xf32, #tpu.memory_space<vmem>>, vector<2x32xf32>,
    return
  }
  func.func @transform_0(%arg0: i32) -> (i32, i32) {
    %c0_i32 = arith.constant 0 : i32
    %c0_i32_0 = arith.constant 0 : i32
    return %arg0, %c0_i32 : i32, i32
  }
  func.func @transform_1(%arg0: i32) -> (i32, i32) {
    %c0_i32 = arith.constant 0 : i32
    %c0_i32_0 = arith.constant 0 : i32
    return %arg0, %c0_i32 : i32, i32
  }
}

</mosaic_0001>

<bundles_post_ra>
// kernel: tpu_custom_call.1
= control target key start
LH: loop header
LB: loop body
LE: loop exit
PB: predicated region body
PF: predicated region fallthrough
CT: control target
= control target key end

     0   :  { %6 = vsyncpa [#allocation3], 0  ;;  %s343_s0 = inlined_call_operand.hbm [shape: f32[2,32], index: 0, kind: input, shape index: {}]   ;;  %s344_s1 = inlined_call_operand.hbm [shape: f32[2,32], index: 1, kind: output, shape index: {}]  }
   0x1   :  { %7 = vsyncpa [#allocation4], 0  ;;  %s227_s6 = smov [#allocation2]   ;;  %s179_s10 = scalar_lea.hbm %s343_s0, 32 }
   0x2   :  { %s14_s7 = sshll.u32 %s227_s6, 4  ;;  %p180_p0 = scmp.ne.s32.totalorder %s343_s0, %s179_s10  ;;  %s15_s7 = int_to_ptr.vmem [resolvable:$true] %s14_s7 }
   0x3   :  { %p183_p1 = scmp.lt.u32.totalorder %s179_s10, %s343_s0 }
   0x5   :  { %p185_p2 = pnand %p183_p1, %p180_p0 }
   0x7   :  { %188 = shalt.err (!%p185_p2)
}
   0x8   :  { %s189_s15 = scalar_lea.vmem %s15_s7, 32  ;;  %p194_p4 = scmp.lt.s32.totalorder %s15_s7, %s15_s7 }
   0x9   :  { %p190_p3 = scmp.ne.s32.totalorder %s15_s7, %s189_s15  ;;  %p195_p5 = scmp.lt.s32.totalorder %s189_s15, %s189_s15 }
   0xb   :  { %p196_p6 = por %p195_p5, %p194_p4 }
   0xd   :  { %p197_p7 = pnand %p196_p6, %p190_p3 }
   0xf   :  { %200 = shalt.err (!%p197_p7)
}
  0x10   :  { %17 = dma.hbm_to_vmem [thread:$0]  %s343_s0, 32, %s15_s7, [#allocation3]  }
  0x11   :  { %223 = dma.done.wait [#allocation3], 32  }
  0x12   :  { %224 = vsyncadd [#allocation3], 4294967264  ;;  %v21_v0 = vld [vmem:[#allocation2] sm:$0x3]  ;;  %s228_s18 = smov 97   ;;  %s229_s19 = smov 127   ;;  %v23_v2 = vlaneseq }
  0x13   :  { %v263_v1 = vmul.f32 2.0, %v21_v0  ;;  %s230_s20 = smov 1   ;;  %s231_s21 = smov 31   ;;  %vm40_vm0 = vcmask 7168   ;;  %vm32_vm1 = vcmask 252928   ;;  %vm53_vm3 = vcmask 244736  }
  0x14   :  { %v24_v3 = vand.u32 127, %v23_v2  ;;  %s232_s0 = smov 30   ;;  %s233_s22 = smov 126   ;;  %vm61_vm4 = vcmask 15360   ;;  %vm74_vm6 = vcmask 228352   ;;  %vm82_vm7 = vcmask 31744  }
  0x15   :  { %34 = vrot.lane.b32.xlu1 %v263_v1, %s228_s18  ;;  %26 = vrot.lane.b32.xlu0 %v263_v1, %s229_s19  ;;  %s234_s23 = smov 2   ;;  %s235_s24 = smov 98   ;;  %vm144_vm9 = vcmask 254976  }
  0x16   :  { %v42_v4 = vand.u32 1, %v24_v3  ;;  %v63_v14 = vand.u32 2, %v24_v3  ;;  %s236_s25 = smov 28   ;;  %s237_s26 = smov 124   ;;  %v84_v24 = vand.u32 4, %v24_v3 }
  0x17   :  { %s238_s27 = smov 4   ;;  %s239_s28 = smov 100  }
  0x18   :  { %vm273_vm2 = vcmp.eq.s32.totalorder %v42_v4, 0  ;;  %vm286_vm5 = vcmp.eq.s32.totalorder %v63_v14, 0  ;;  %vm298_vm8 = vcmp.eq.s32.totalorder %v84_v24, 0  ;;  %s240_s29 = smov [#allocation5]  }
  0x19   :  { %37 = vrot.lane.b32.xlu1 %v263_v1, %s230_s20  ;;  %29 = vrot.lane.b32.xlu0 %v263_v1, %s231_s21  ;;  %s152_s30 = sshll.u32 %s240_s29, 4  ;;  %s153_s30 = int_to_ptr.vmem [resolvable:$true] %s152_s30 }
  0x1a   :  { %s201_s2 = scalar_lea.vmem %s153_s30, 32  ;;  %p206_p9 = scmp.lt.s32.totalorder %s153_s30, %s153_s30 }
  0x1b   :  { %p202_p8 = scmp.ne.s32.totalorder %s153_s30, %s201_s2  ;;  %p207_p10 = scmp.lt.s32.totalorder %s201_s2, %s201_s2 }
  0x1d   :  { %p208_p11 = por %p207_p10, %p206_p9 }
  0x1f   :  { %p209_p12 = pnand %p208_p11, %p202_p8 }
  0x87   :  { %v35_v5 = vpop.permute.xlu1 %34  ;;  %v27_v6 = vpop.permute.xlu0 %26 }
  0x8b   :  { %v38_v8 = vpop.permute.xlu1 %37  ;;  %v30_v9 = vpop.permute.xlu0 %29 }
  0x8c   :  { %v41_v10 = vsel %vm40_vm0, %v35_v5, %v38_v8  ;;  %v33_v11 = vsel %vm32_vm1, %v27_v6, %v30_v9 }
  0x8d   :  { %v44_v12 = vsel %vm273_vm2, %v33_v11, %v41_v10 }
  0x8e   :  { %v45_v13 = vmax.f32 %v263_v1, %v44_v12 }
  0x90   :  { %50 = vrot.lane.b32.xlu1 %v45_v13, %s232_s0  ;;  %47 = vrot.lane.b32.xlu0 %v45_v13, %s233_s22 }
  0x94   :  { %58 = vrot.lane.b32.xlu1 %v45_v13, %s234_s23  ;;  %55 = vrot.lane.b32.xlu0 %v45_v13, %s235_s24 }
 0x102   :  { %v51_v15 = vpop.permute.xlu1 %50  ;;  %v48_v16 = vpop.permute.xlu0 %47 }
 0x103   :  { %v54_v20 = vsel %vm53_vm3, %v48_v16, %v51_v15 }
 0x106   :  { %v59_v18 = vpop.permute.xlu1 %58  ;;  %v56_v19 = vpop.permute.xlu0 %55 }
 0x107   :  { %v62_v21 = vsel %vm61_vm4, %v56_v19, %v59_v18 }
 0x108   :  { %v65_v22 = vsel %vm286_vm5, %v54_v20, %v62_v21 }
 0x109   :  { %v66_v23 = vmax.f32 %v45_v13, %v65_v22 }
 0x10b   :  { %71 = vrot.lane.b32.xlu1 %v66_v23, %s236_s25  ;;  %68 = vrot.lane.b32.xlu0 %v66_v23, %s237_s26 }
 0x10f   :  { %79 = vrot.lane.b32.xlu1 %v66_v23, %s238_s27  ;;  %76 = vrot.lane.b32.xlu0 %v66_v23, %s239_s28 }
 0x17d   :  { %v72_v25 = vpop.permute.xlu1 %71  ;;  %v69_v26 = vpop.permute.xlu0 %68 }
 0x17e   :  { %v75_v30 = vsel %vm74_vm6, %v69_v26, %v72_v25 }
 0x181   :  { %v80_v28 = vpop.permute.xlu1 %79  ;;  %v77_v29 = vpop.permute.xlu0 %76 }
 0x182   :  { %v83_v31 = vsel %vm82_vm7, %v77_v29, %v80_v28 }
 0x183   :  { %v86_v32 = vsel %vm298_vm8, %v75_v30, %v83_v31 }
 0x184   :  { %v87_v33 = vmax.f32 %v66_v23, %v86_v32 }
 0x186   :  { %v88_v34 = vsub.f32 %v263_v1, %v87_v33 }
 0x188   :  { %v89_v35 = vmul.f32 1.442695, %v88_v34 }
 0x18a   :  { %175 = vpow2.f32 %v89_v35 }
 0x194   :  { %v176_v36 = vpop.eup %175 }
 0x195   :  { %95 = vrot.lane.b32.xlu1 %v176_v36, %s231_s21  ;;  %92 = vrot.lane.b32.xlu0 %v176_v36, %s229_s19 }
 0x199   :  { %102 = vrot.lane.b32.xlu1 %v176_v36, %s230_s20  ;;  %99 = vrot.lane.b32.xlu0 %v176_v36, %s228_s18 }
 0x207   :  { %v96_v37 = vpop.permute.xlu1 %95  ;;  %v93_v38 = vpop.permute.xlu0 %92 }
 0x208   :  { %v98_v41 = vsel %vm32_vm1, %v93_v38, %v96_v37 }
 0x20b   :  { %v103_v39 = vpop.permute.xlu1 %102  ;;  %v100_v40 = vpop.permute.xlu0 %99 }
 0x20c   :  { %v105_v42 = vsel %vm40_vm0, %v100_v40, %v103_v39 }
 0x20d   :  { %v106_v43 = vsel %vm273_vm2, %v98_v41, %v105_v42 }
 0x20e   :  { %v107_v44 = vadd.f32 %v176_v36, %v106_v43 }
 0x210   :  { %112 = vrot.lane.b32.xlu1 %v107_v44, %s232_s0  ;;  %109 = vrot.lane.b32.xlu0 %v107_v44, %s233_s22 }
 0x214   :  { %119 = vrot.lane.b32.xlu1 %v107_v44, %s234_s23  ;;  %116 = vrot.lane.b32.xlu0 %v107_v44, %s235_s24 }
 0x282   :  { %v113_v45 = vpop.permute.xlu1 %112  ;;  %v110_v46 = vpop.permute.xlu0 %109 }
 0x283   :  { %v115_v49 = vsel %vm53_vm3, %v110_v46, %v113_v45 }
 0x286   :  { %v120_v47 = vpop.permute.xlu1 %119  ;;  %v117_v48 = vpop.permute.xlu0 %116 }
 0x287   :  { %v122_v50 = vsel %vm61_vm4, %v117_v48, %v120_v47 }
 0x288   :  { %v123_v51 = vsel %vm286_vm5, %v115_v49, %v122_v50 }
 0x289   :  { %v124_v52 = vadd.f32 %v123_v51, %v107_v44 }
 0x28b   :  { %129 = vrot.lane.b32.xlu1 %v124_v52, %s236_s25  ;;  %126 = vrot.lane.b32.xlu0 %v124_v52, %s237_s26 }
 0x28f   :  { %136 = vrot.lane.b32.xlu1 %v124_v52, %s238_s27  ;;  %133 = vrot.lane.b32.xlu0 %v124_v52, %s239_s28 }
 0x2fd   :  { %v130_v53 = vpop.permute.xlu1 %129  ;;  %v127_v54 = vpop.permute.xlu0 %126 }
 0x2fe   :  { %v132_v57 = vsel %vm74_vm6, %v127_v54, %v130_v53 }
 0x301   :  { %v137_v55 = vpop.permute.xlu1 %136  ;;  %v134_v56 = vpop.permute.xlu0 %133 }
 0x302   :  { %v139_v58 = vsel %vm82_vm7, %v134_v56, %v137_v55 }
 0x303   :  { %v140_v59 = vsel %vm298_vm8, %v132_v57, %v139_v58 }
 0x304   :  { %v141_v60 = vadd.f32 %v140_v59, %v124_v52 }
 0x306   :  { %177 = vrcp.f32 %v141_v60 }
 0x310   :  { %v178_v61 = vpop.eup %177 }
 0x311   :  { %v143_v62 = vmul.f32 %v178_v61, %v176_v36 }
 0x313   :  { %145 = vst.msk [vmem:[#allocation5] sm:$0x3] %vm144_vm9, %v143_v62 }
 0x314   :  { %212 = shalt.err (!%p209_p12)
}
 0x315   :  { %s213_s5 = scalar_lea.hbm %s344_s1, 32 }
 0x316   :  { %p214_p13 = scmp.ne.s32.totalorder %s344_s1, %s213_s5  ;;  %p217_p0 = scmp.lt.u32.totalorder %s213_s5, %s344_s1 }
 0x318   :  { %p219_p1 = pnand %p217_p0, %p214_p13 }
 0x31a   :  { %222 = shalt.err (!%p219_p1)
}
 0x31b   :  { %155 = dma.vmem_to_hbm [thread:$0]  %s153_s30, 32, %s344_s1, [#allocation4]  }
 0x31c   :  { %225 = dma.done.wait [#allocation4], 32  }
 0x31d   :  { %226 = vsyncadd [#allocation4], 4294967264 }
 0x31e   :  { %159 = vsyncpa [#allocation3], 1 }
 0x31f   :  { %160 = vsyncpa [#allocation4], 1 }

</bundles_post_ra>
